<compile_context>
chip_gen: v6e
topology: v6e:2x2x1
jax: 0.10.0
libtpu: 0.0.40
codegen_flags: <defaults>
</compile_context>

<pallas_src>
import functools

import jax
import jax.numpy as jnp
from jax.experimental import pallas as pl
from jax.experimental.pallas import tpu as pltpu


def _normalized_probs_kernel(x_ref, o_ref, *, log_probs: bool):
    """Softmax / log-softmax along the lane (last) axis of one (tile, V) slab."""
    x = x_ref[...].astype(jnp.float32)
    m = jnp.max(x, axis=-1, keepdims=True)            # XLU cross-lane reduce
    x = x - m                                          # shifted logits (reuse x)
    if log_probs:
        s = jnp.sum(jnp.exp(x), axis=-1, keepdims=True)
        o_ref[...] = (x - jnp.log(s)).astype(o_ref.dtype)
    else:
        e = jnp.exp(x)                                 # EUP
        s = jnp.sum(e, axis=-1, keepdims=True)         # XLU cross-lane reduce
        r = pl.reciprocal(s, approx=True)              # EUP vrcp (free slot)
        r = r * (2.0 - s * r)                          # one Newton step -> ~f32 acc.
        o_ref[...] = (e * r).astype(o_ref.dtype)


def _vmem_capacity_bytes() -> int:
    """Physical VMEM per TensorCore, with a per-generation fallback table."""
    try:
        info = pltpu.get_tpu_info()
        cap = getattr(info, "vmem_capacity_bytes", None)
        if cap:
            return int(cap)
    except Exception:
        pass
    try:
        kind = jax.devices()[0].device_kind.lower()
    except Exception:
        kind = ""
    # v4 / v5e / v6e parts have 128 MiB per TensorCore; v7x has 64 MiB.
    if any(tag in kind for tag in ("v4", "v5", "v6")):
        return 128 * 1024 * 1024
    return 64 * 1024 * 1024


def _per_row_bytes(v: int, in_bytes: int, out_bytes: int) -> int:
    # Double-buffered in/out blocks + ~2 single-buffered f32 in-kernel
    # temporaries (the f32 cast / exp intermediates Mosaic must hold).
    return 2 * v * (in_bytes + out_bytes) + 8 * v


def _pick_row_tile(num_rows: int, v: int, in_bytes: int, out_bytes: int,
                   vmem_cap: int) -> int:
    """Largest row tile (multiple of 8, or the full row count) fitting the budget."""
    budget = int(vmem_cap * 0.55)                      # headroom for scratch/temps
    per_row = _per_row_bytes(v, in_bytes, out_bytes)
    tile = (budget // max(per_row, 1)) // 8 * 8
    tile = max(8, min(tile, 1024))
    # Clamping to num_rows keeps the block legal: either a multiple of 8 or
    # exactly the full (possibly ragged) row extent of the array.
    # NOTE: for extremely large vocabularies even an 8-row whole-row block may
    # not fit; a two-pass vocab-tiled online softmax would be needed there.
    return min(tile, num_rows)


def _run_softmax_pallas(logits_2d: jnp.ndarray, log_probs: bool,
                        out_dtype) -> jnp.ndarray:
    """logits_2d: unpadded (R, V).  Returns (R, V) in out_dtype."""
    R, V = logits_2d.shape
    in_bytes = int(jnp.dtype(logits_2d.dtype).itemsize)
    out_bytes = int(jnp.dtype(out_dtype).itemsize)
    vmem_cap = _vmem_capacity_bytes()

    tile = _pick_row_tile(R, V, in_bytes, out_bytes, vmem_cap)
    grid_rows = pl.cdiv(R, tile)

    needed = tile * _per_row_bytes(V, in_bytes, out_bytes)
    vmem_limit = int(min(int(vmem_cap * 0.9),
                         max(needed + needed // 4, 32 * 1024 * 1024)))

    cost = pl.CostEstimate(
        flops=5 * R * V,
        transcendentals=R * V,
        bytes_accessed=R * V * (in_bytes + out_bytes),
    )

    kernel = functools.partial(_normalized_probs_kernel, log_probs=bool(log_probs))

    def call(semantics):
        return pl.pallas_call(
            kernel,
            out_shape=jax.ShapeDtypeStruct((R, V), out_dtype),
            grid_spec=pltpu.PrefetchScalarGridSpec(
                num_scalar_prefetch=0,
                grid=(grid_rows,),
                in_specs=[pl.BlockSpec((tile, V), lambda i: (i, 0))],
                out_specs=pl.BlockSpec((tile, V), lambda i: (i, 0)),
            ),
            compiler_params=pltpu.CompilerParams(
                dimension_semantics=semantics,
                vmem_limit_bytes=vmem_limit,
            ),
            cost_estimate=cost,
        )(logits_2d)

    # Prefer genuine per-TensorCore sharding of the row axis (v7x: 2 TCs/chip;
    # plain "parallel" vs "arbitrary" is a measured codegen no-op).  Fall back
    # to "parallel" if CORE_PARALLEL is rejected (1-TC chips, tiny grids).
    candidates = []
    if grid_rows >= 2 and hasattr(pltpu, "CORE_PARALLEL"):
        candidates.append((pltpu.CORE_PARALLEL,))
    candidates.append(("parallel",))

    last_err = None
    for sem in candidates:
        try:
            return call(sem)
        except Exception as err:          # lowering/compile rejection -> fall back
            last_err = err
    raise last_err


class FairseqDecoderPallas:
    """JAX/Pallas port of the FairseqDecoder base class."""

    def __init__(self, dictionary):
        self.dictionary = dictionary

    def forward(self, prev_output_tokens, encoder_out):
        # TODO(synk): base class leaves forward abstract; nothing to translate.
        raise NotImplementedError

    def get_normalized_probs(self, net_output, log_probs, _=None,
                             out_dtype=jnp.float32):
        """Get normalized probabilities (or log probs) from a net's output.

        out_dtype defaults to float32 for parity with `.float()`; pass the
        input dtype (e.g. bf16) to halve write traffic on mem-bound decode.
        """
        logits = jnp.asarray(net_output[0])
        if not jnp.issubdtype(logits.dtype, jnp.floating):
            logits = logits.astype(jnp.float32)

        orig_shape = logits.shape
        V = orig_shape[-1]
        rows = 1
        for d in orig_shape[:-1]:
            rows *= d
        flat = logits.reshape(rows, V)      # metadata only — no pad, no copy

        out = _run_softmax_pallas(flat, bool(log_probs), out_dtype)
        return out.reshape(orig_shape)

    def max_positions(self):
        raise NotImplementedError

    def upgrade_state_dict(self, state_dict):
        return state_dict


if __name__ == "__main__":
    # Small deterministic example: batch=2, seq=8, vocab=32 (vocab deliberately
    # NOT a multiple of 128 to exercise the unpadded ragged-lane path).
    key = jax.random.PRNGKey(0)
    B, T, V = 2, 8, 32
    logits = jax.random.normal(key, (B, T, V), dtype=jnp.float32) * 3.0

    decoder = FairseqDecoderPallas(dictionary=None)
    net_output = (logits,)

    probs = decoder.get_normalized_probs(net_output, log_probs=False)
    logprobs = decoder.get_normalized_probs(net_output, log_probs=True)
    jax.block_until_ready(probs)
    jax.block_until_ready(logprobs)

    # Sanity check against pure-JAX reference.
    ref_probs = jax.nn.softmax(logits, axis=-1)
    ref_logprobs = jax.nn.log_softmax(logits, axis=-1)
    assert probs.shape == logits.shape and probs.dtype == jnp.float32
    assert jnp.allclose(probs, ref_probs, atol=1e-4, rtol=1e-4)
    assert jnp.allclose(logprobs, ref_logprobs, atol=1e-4, rtol=1e-4)
    assert jnp.allclose(jnp.sum(probs, axis=-1), 1.0, atol=1e-3)

    # Native-dtype (bf16) logits: no wrapper upcast, cast happens in-VMEM.
    logits_bf16 = logits.astype(jnp.bfloat16)
    probs_bf16 = decoder.get_normalized_probs((logits_bf16,), log_probs=False)
    jax.block_until_ready(probs_bf16)
    ref_bf16 = jax.nn.softmax(logits_bf16.astype(jnp.float32), axis=-1)
    assert probs_bf16.dtype == jnp.float32
    assert jnp.allclose(probs_bf16, ref_bf16, atol=1e-3, rtol=1e-3)

    # Optional reduced-width output stream (write-traffic saver on v5e).
    probs_out_bf16 = decoder.get_normalized_probs(
        (logits_bf16,), log_probs=False, out_dtype=jnp.bfloat16)
    jax.block_until_ready(probs_out_bf16)
    assert probs_out_bf16.dtype == jnp.bfloat16
    assert jnp.allclose(probs_out_bf16.astype(jnp.float32), ref_bf16,
                        atol=1e-2, rtol=1e-2)

    print("KERNEL_OK")
</pallas_src>

<mosaic_0001>
module attributes {stable_mosaic.version = 11 : i64} {
  func.func @_normalized_probs_kernel(%arg0: i32, %arg1: memref<16x32xf32, #tpu.memory_space<vmem>>, %arg2: memref<16x32xf32, #tpu.memory_space<vmem>>) attributes {dimension_semantics = [#tpu.dimension_semantics<parallel>], iteration_bounds = array<i64: 1>, scalar_prefetch = 0 : i64, scratch_operands = 0 : i64, tpu.core_type = #tpu.core_type<tc>, window_params = [{transform_indices = @transform_0, window_bounds = array<i64: 16, 32>}, {transform_indices = @transform_1, window_bounds = array<i64: 16, 32>}]} {
    %c0 = arith.constant 0 : index
    %c0_0 = arith.constant 0 : index
    %0 = vector.load %arg1[%c0, %c0_0] : memref<16x32xf32, #tpu.memory_space<vmem>>, vector<16x32xf32>
    %cst = arith.constant dense<0xFF800000> : vector<16xf32>
    %1 = vector.multi_reduction <maximumf>, %0, %cst [1] : vector<16x32xf32> to vector<16xf32>
    %2 = vector.shape_cast %1 : vector<16xf32> to vector<16x1xf32>
    %3 = vector.broadcast %2 : vector<16x1xf32> to vector<16x32xf32>
    %4 = arith.subf %0, %3 : vector<16x32xf32>
    %5 = math.exp %4 : vector<16x32xf32>
    %cst_1 = arith.constant dense<0.000000e+00> : vector<16xf32>
    %6 = vector.multi_reduction <add>, %5, %cst_1 [1] : vector<16x32xf32> to vector<16xf32>
    %7 = vector.shape_cast %6 : vector<16xf32> to vector<16x1xf32>
    %8 = tpu.reciprocal %7 {approx = true} : vector<16x1xf32> -> vector<16x1xf32>
    %9 = arith.mulf %7, %8 : vector<16x1xf32>
    %cst_2 = arith.constant 2.000000e+00 : f32
    %10 = vector.broadcast %cst_2 : f32 to vector<16x1xf32>
    %11 = arith.subf %10, %9 : vector<16x1xf32>
    %12 = arith.mulf %8, %11 : vector<16x1xf32>
    %13 = vector.broadcast %12 : vector<16x1xf32> to vector<16x32xf32>
    %14 = arith.mulf %5, %13 : vector<16x32xf32>
    %c0_3 = arith.constant 0 : index
    %c0_4 = arith.constant 0 : index
    %15 = vector.load %arg2[%c0_3, %c0_4] : memref<16x32xf32, #tpu.memory_space<vmem>>, vector<16x32xf32>
    tpu.vector_store %arg2[%c0_3, %c0_4], %14 {strides = array<i32>} : memref<16x32xf32, #tpu.memory_space<vmem>>, vector<16x32xf32>,
    return
  }
  func.func @transform_0(%arg0: i32) -> (i32, i32) {
    %c0_i32 = arith.constant 0 : i32
    %c0_i32_0 = arith.constant 0 : i32
    return %arg0, %c0_i32 : i32, i32
  }
  func.func @transform_1(%arg0: i32) -> (i32, i32) {
    %c0_i32 = arith.constant 0 : i32
    %c0_i32_0 = arith.constant 0 : i32
    return %arg0, %c0_i32 : i32, i32
  }
}

</mosaic_0001>

<bundles_post_ra>
// kernel: tpu_custom_call.1
= control target key start
LH: loop header
LB: loop body
LE: loop exit
PB: predicated region body
PF: predicated region fallthrough
CT: control target
= control target key end

     0   :  { %6 = vsyncpa [#allocation3], 0  ;;  %s161_s0 = inlined_call_operand.hbm [shape: f32[16,32], index: 0, kind: input, shape index: {}]   ;;  %s162_s1 = inlined_call_operand.hbm [shape: f32[16,32], index: 1, kind: output, shape index: {}]  }
   0x1   :  { %7 = vsyncpa [#allocation4], 0  ;;  %s129_s6 = smov [#allocation2]  }
   0x2   :  { %s13_s7 = sshll.u32 %s129_s6, 4  ;;  %s14_s7 = int_to_ptr.vmem [resolvable:$true] %s13_s7 }
   0x3   :  { %s93_s8 = scalar_lea.vmem %s14_s7, 256  ;;  %p98_p1 = scmp.lt.s32.totalorder %s14_s7, %s14_s7 }
   0x4   :  { %p94_p0 = scmp.ne.s32.totalorder %s14_s7, %s93_s8  ;;  %p99_p2 = scmp.lt.s32.totalorder %s93_s8, %s93_s8 }
   0x6   :  { %p100_p3 = por %p99_p2, %p98_p1 }
   0x8   :  { %p101_p4 = pnand %p100_p3, %p94_p0 }
   0xa   :  { %104 = shalt.err (!%p101_p4)
}
   0xb   :  { %s130_s9 = smov 128   ;;  %s131_s10 = smov 8  }
   0xc   :  { %19 = dma.hbm_to_vmem [thread:$0]  %s161_s0, 256, %s14_s7, [#allocation3], %s130_s9, %s130_s9, %s131_s10  }
   0xd   :  { %125 = dma.done.wait [#allocation3], 256  }
   0xe   :  { %126 = vsyncadd [#allocation3], 4294967040  ;;  %vm25_vm0 = vcmask 261120   ;;  %v23_v0 = vld [vmem:[#allocation2] sm:$0xff]  ;;  %v24_v1 = vld [vmem:[#allocation2 + $0x8] sm:$0xff]  ;;  %s132_s0 = smov [#allocation5]  }
   0xf   :  { %v26_v2 = vsel %vm25_vm0, %v23_v0, -inf  ;;  %v29_v3 = vsel %vm25_vm0, %v24_v1, -inf  ;;  %s61_s13 = sshll.u32 %s132_s0, 4  ;;  %s62_s13 = int_to_ptr.vmem [resolvable:$true] %s61_s13 }
  0x10   :  { %27 = vmax.xlane.f32.xlu0 %v26_v2  ;;  %s105_s14 = scalar_lea.vmem %s62_s13, 256  ;;  %p110_p6 = scmp.lt.s32.totalorder %s62_s13, %s62_s13 }
  0x11   :  { %p106_p5 = scmp.ne.s32.totalorder %s62_s13, %s105_s14  ;;  %p111_p7 = scmp.lt.s32.totalorder %s105_s14, %s105_s14 }
  0x13   :  { %p112_p8 = por %p111_p7, %p110_p6 }
  0x14   :  { %30 = vmax.xlane.f32.xlu0 %v29_v3 }
  0x15   :  { %p113_p9 = pnand %p112_p8, %p106_p5 }
  0x99   :  { %v28_v4 = vpop.xlane.xlu0 %27 }
  0x9a   :  { %v32_v5 = vsub.f32 %v23_v0, %v28_v4 }
  0x9c   :  { %v34_v6 = vmul.f32 1.442695, %v32_v5 }
  0x9d   :  { %v31_v7 = vpop.xlane.xlu0 %30 }
  0x9e   :  { %77 = vpow2.f32 %v34_v6  ;;  %v33_v8 = vsub.f32 %v24_v1, %v31_v7 }
  0xa0   :  { %v36_v9 = vmul.f32 1.442695, %v33_v8 }
  0xa2   :  { %79 = vpow2.f32 %v36_v9 }
  0xab   :  { %v78_v10 = vpop.eup %77 }
  0xac   :  { %v38_v11 = vsel %vm25_vm0, %v78_v10, 0.0 }
  0xad   :  { %39 = vadd.xlane.f32.xlu1 %v38_v11 }
  0xaf   :  { %v80_v12 = vpop.eup %79 }
  0xb0   :  { %v41_v13 = vsel %vm25_vm0, %v80_v12, 0.0 }
  0xb1   :  { %42 = vadd.xlane.f32.xlu1 %v41_v13 }
 0x136   :  { %v40_v14 = vpop.xlane.xlu1 %39 }
 0x137   :  { %81 = vrcp.f32 %v40_v14 }
 0x13a   :  { %v43_v15 = vpop.xlane.xlu1 %42 }
 0x13b   :  { %83 = vrcp.f32 %v43_v15 }
 0x144   :  { %v82_v16 = vpop.eup %81 }
 0x145   :  { %v46_v17 = vmul.f32 %v82_v16, %v40_v14 }
 0x147   :  { %v48_v18 = vsub.f32 2.0, %v46_v17 }
 0x148   :  { %v84_v19 = vpop.eup %83 }
 0x149   :  { %v50_v20 = vmul.f32 %v82_v16, %v48_v18  ;;  %v47_v21 = vmul.f32 %v84_v19, %v43_v15 }
 0x14b   :  { %v52_v22 = vmul.f32 %v78_v10, %v50_v20  ;;  %v49_v23 = vsub.f32 2.0, %v47_v21 }
 0x14d   :  { %54 = vst.msk [vmem:[#allocation5] sm:$0xff] %vm25_vm0, %v52_v22  ;;  %v51_v24 = vmul.f32 %v84_v19, %v49_v23 }
 0x14f   :  { %v53_v25 = vmul.f32 %v80_v12, %v51_v24 }
 0x151   :  { %55 = vst.msk [vmem:[#allocation5 + $0x8] sm:$0xff] %vm25_vm0, %v53_v25 }
 0x152   :  { %116 = shalt.err (!%p113_p9)
}
 0x153   :  { %67 = dma.vmem_to_hbm [thread:$0]  %s62_s13, 256, %s162_s1, [#allocation4], %s130_s9, %s130_s9, %s131_s10  }
 0x154   :  { %127 = dma.done.wait [#allocation4], 256  }
 0x155   :  { %128 = vsyncadd [#allocation4], 4294967040 }
 0x156   :  { %71 = vsyncpa [#allocation3], 1 }
 0x157   :  { %72 = vsyncpa [#allocation4], 1 }

</bundles_post_ra>
